<compile_context>
chip_gen: v6e
topology: v6e:2x2x1
jax: 0.10.0
libtpu: 0.0.40
codegen_flags: <defaults>
</compile_context>

<pallas_src>
import functools

import jax
import jax.numpy as jnp
from jax import lax
from jax.experimental import pallas as pl
from jax.experimental.pallas import tpu as pltpu


def _round_up(x, m):
    return (x + m - 1) // m * m


def _num_grid_blocks(n_batch):
    """2-way parallel grid on v7x (2 TensorCores/chip); one fat step otherwise."""
    try:
        kind = jax.devices()[0].device_kind.lower()
    except Exception:
        kind = ""
    two_tc = ("v7" in kind) or ("7x" in kind)
    if two_tc and n_batch >= 2 and n_batch % 2 == 0:
        return 2
    return 1


def _cba_kernel(x_ref, w_ref, scale_ref, bias_ref, o_ref, *, Wp, P, KH, KW, Nb):
    # x_ref:     (1, Cin_pad, Lin) bf16 -- Nb images, each a P-lane flattened
    #            zero-padded slab (row-major over (Hp, Wp)), plus an aligned
    #            zero tail so every tap window [off, off+Nb*P) is in-block.
    # w_ref:     (Cout, KH*KW*Cin_pad) bf16, column = (kh*KW + kw)*Cin_pad + ci.
    # scale_ref: (Cout, 1) f32  folded BN scale = gamma / sqrt(var + eps)
    # bias_ref:  (Cout, 1) f32  folded BN bias  = beta - mean * scale
    # o_ref:     (Nb, Cout, P)  lane-dense output slab; o[j, co, h*Wp+w] = out.
    width = Nb * P

    # 9 statically lane-shifted views, loaded directly from the VMEM ref,
    # stacked along the contraction dim -> one well-shaped MXU matmul.
    taps = []
    for kh in range(KH):
        for kw in range(KW):
            off = kh * Wp + kw
            taps.append(x_ref[0, :, pl.ds(off, width)])        # (Cin_pad, width)
    patches = jnp.concatenate(taps, axis=0)                    # (K, width)

    acc = jnp.dot(w_ref[...], patches,
                  preferred_element_type=jnp.float32)          # (Cout, width) f32

    # Fused folded BatchNorm (eval) + ReLU, in f32.
    y = jnp.maximum(acc * scale_ref[...] + bias_ref[...], 0.0)
    y = y.astype(o_ref.dtype)
    for j in range(Nb):
        o_ref[j] = y[:, j * P:(j + 1) * P]                     # aligned (Cout, P) store


def cba_forward(x_nchw, weight_oihw, gamma, beta, running_mean, running_var,
                eps=1e-5, out_dtype=jnp.float32):
    """Fused Conv3x3(stride 1, 'same', no bias) + BN(eval) + ReLU.

    x_nchw:      (N, Cin, H, W)      float32  (PyTorch layout)
    weight_oihw: (Cout, Cin, 3, 3)   float32  (PyTorch layout)
    returns:     (N, Cout, H, W)     out_dtype (default float32)
    """
    N, Cin, H, W = x_nchw.shape
    Cout, _, KH, KW = weight_oihw.shape
    ph, pw = KH // 2, KW // 2
    Hp, Wp = H + 2 * ph, W + 2 * pw

    P = _round_up(Hp * Wp, 128)              # per-image lane-dense slab length
    max_off = (KH - 1) * Wp + (KW - 1)       # largest tap lane shift
    Tpad = _round_up(max_off, 128)           # per-block zero tail (aligned)
    Cin_pad = _round_up(Cin, 8)              # full sublane groups per tap
    K = KH * KW * Cin_pad                    # contraction dim, multiple of 8

    G = _num_grid_blocks(N)                  # grid steps (2 on v7x, else 1)
    Nb = N // G                              # images folded per grid step
    Lin = Nb * P + Tpad                      # per-block input lane count

    # --- glue (plain JAX; stays NCHW, only small pads / reshapes) -----------
    xp = jnp.pad(x_nchw, ((0, 0), (0, Cin_pad - Cin), (ph, ph), (pw, pw)))
    xf = xp.reshape(N, Cin_pad, Hp * Wp)
    xf = jnp.pad(xf, ((0, 0), (0, 0), (0, P - Hp * Wp)))       # (N, Cin_pad, P)
    xf = xf.reshape(G, Nb, Cin_pad, P).transpose(0, 2, 1, 3)
    xf = xf.reshape(G, Cin_pad, Nb * P)
    xf = jnp.pad(xf, ((0, 0), (0, 0), (0, Tpad))).astype(jnp.bfloat16)  # (G, Cin_pad, Lin)

    # (Cout, K), column index = (kh*KW + kw)*Cin_pad + ci (matches tap stacking)
    w = jnp.transpose(weight_oihw, (0, 2, 3, 1))                # (Cout, KH, KW, Cin)
    w = jnp.pad(w, ((0, 0), (0, 0), (0, 0), (0, Cin_pad - Cin)))
    w_mat = w.reshape(Cout, K).astype(jnp.bfloat16)

    scale = (gamma / jnp.sqrt(running_var + eps)).astype(jnp.float32)
    bias = (beta - running_mean * scale).astype(jnp.float32)
    scale2d = scale.reshape(Cout, 1)
    bias2d = bias.reshape(Cout, 1)

    kernel = functools.partial(_cba_kernel, Wp=Wp, P=P, KH=KH, KW=KW, Nb=Nb)

    out_slab = pl.pallas_call(
        kernel,
        out_shape=jax.ShapeDtypeStruct((N, Cout, P), out_dtype),
        grid_spec=pltpu.PrefetchScalarGridSpec(
            num_scalar_prefetch=0,
            grid=(G,),
            in_specs=[
                pl.BlockSpec((1, Cin_pad, Lin), lambda g: (g, 0, 0)),
                pl.BlockSpec((Cout, K), lambda g: (0, 0)),
                pl.BlockSpec((Cout, 1), lambda g: (0, 0)),
                pl.BlockSpec((Cout, 1), lambda g: (0, 0)),
            ],
            out_specs=pl.BlockSpec((Nb, Cout, P), lambda g: (g, 0, 0)),
        ),
        compiler_params=pltpu.CompilerParams(
            dimension_semantics=("parallel",),
            vmem_limit_bytes=32 * 1024 * 1024,
        ),
    )(xf, w_mat, scale2d, bias2d)

    # Carve the valid (H, W) window out of the lane-dense slab.
    out = out_slab[:, :, :H * Wp].reshape(N, Cout, H, Wp)[:, :, :, :W]
    return out


def _reference(x_nchw, weight_oihw, gamma, beta, running_mean, running_var,
               eps=1e-5):
    # Match the kernel's bf16 input/weight rounding (bf16 x bf16 MXU products
    # are exact in f32, accumulation is f32), then f32 conv + folded BN + ReLU.
    xb = x_nchw.astype(jnp.bfloat16).astype(jnp.float32)
    wb = weight_oihw.astype(jnp.bfloat16).astype(jnp.float32)
    y = lax.conv_general_dilated(
        xb, wb, window_strides=(1, 1), padding="SAME",
        dimension_numbers=("NCHW", "OIHW", "NCHW"))
    scale = gamma / jnp.sqrt(running_var + eps)
    bias = beta - running_mean * scale
    y = y * scale[None, :, None, None] + bias[None, :, None, None]
    return jnp.maximum(y, 0.0)


if __name__ == "__main__":
    key = jax.random.PRNGKey(0)
    k_x, k_w, k_g, k_b, k_m, k_v = jax.random.split(key, 6)

    N, Cin, H, W = 2, 4, 16, 16
    Cout, KH, KW = 8, 3, 3

    x = jax.random.normal(k_x, (N, Cin, H, W), dtype=jnp.float32)
    weight = jax.random.normal(k_w, (Cout, Cin, KH, KW), dtype=jnp.float32) * 0.1
    gamma = 1.0 + 0.1 * jax.random.normal(k_g, (Cout,), dtype=jnp.float32)
    beta = 0.1 * jax.random.normal(k_b, (Cout,), dtype=jnp.float32)
    running_mean = 0.1 * jax.random.normal(k_m, (Cout,), dtype=jnp.float32)
    running_var = jnp.abs(
        1.0 + 0.1 * jax.random.normal(k_v, (Cout,), dtype=jnp.float32))

    out = cba_forward(x, weight, gamma, beta, running_mean, running_var)
    out = jax.block_until_ready(out)

    ref = _reference(x, weight, gamma, beta, running_mean, running_var)
    assert out.shape == (N, Cout, H, W), out.shape
    assert jnp.allclose(out, ref, atol=1e-3, rtol=1e-3), float(
        jnp.max(jnp.abs(out - ref)))

    print("KERNEL_OK")
</pallas_src>

<mosaic_0001>
module attributes {stable_mosaic.version = 11 : i64} {
  func.func @_cba_kernel(%arg0: i32, %arg1: memref<1x8x896xbf16, #tpu.memory_space<vmem>>, %arg2: memref<8x72xbf16, #tpu.memory_space<vmem>>, %arg3: memref<8x1xf32, #tpu.memory_space<vmem>>, %arg4: memref<8x1xf32, #tpu.memory_space<vmem>>, %arg5: memref<2x8x384xf32, #tpu.memory_space<vmem>>) attributes {dimension_semantics = [#tpu.dimension_semantics<parallel>], iteration_bounds = array<i64: 1>, scalar_prefetch = 0 : i64, scratch_operands = 0 : i64, tpu.core_type = #tpu.core_type<tc>, window_params = [{transform_indices = @transform_0, window_bounds = array<i64: 1, 8, 896>}, {pipeline_mode = #tpu.pipeline_mode<synchronous>, transform_indices = @transform_1, window_bounds = array<i64: 8, 72>}, {pipeline_mode = #tpu.pipeline_mode<synchronous>, transform_indices = @transform_2, window_bounds = array<i64: 8, 1>}, {pipeline_mode = #tpu.pipeline_mode<synchronous>, transform_indices = @transform_3, window_bounds = array<i64: 8, 1>}, {transform_indices = @transform_4, window_bounds = array<i64: 2, 8, 384>}]} {
    %c0 = arith.constant 0 : index
    %c0_0 = arith.constant 0 : index
    %c0_1 = arith.constant 0 : index
    %0 = vector.load %arg1[%c0, %c0_0, %c0_1] : memref<1x8x896xbf16, #tpu.memory_space<vmem>>, vector<1x8x768xbf16>
    %1 = vector.shape_cast %0 : vector<1x8x768xbf16> to vector<8x768xbf16>
    %c0_2 = arith.constant 0 : index
    %c0_3 = arith.constant 0 : index
    %c1 = arith.constant 1 : index
    %2 = vector.load %arg1[%c0_2, %c0_3, %c1] : memref<1x8x896xbf16, #tpu.memory_space<vmem>>, vector<1x8x768xbf16>
    %3 = vector.shape_cast %2 : vector<1x8x768xbf16> to vector<8x768xbf16>
    %c0_4 = arith.constant 0 : index
    %c0_5 = arith.constant 0 : index
    %c2 = arith.constant 2 : index
    %4 = vector.load %arg1[%c0_4, %c0_5, %c2] : memref<1x8x896xbf16, #tpu.memory_space<vmem>>, vector<1x8x768xbf16>
    %5 = vector.shape_cast %4 : vector<1x8x768xbf16> to vector<8x768xbf16>
    %c0_6 = arith.constant 0 : index
    %c0_7 = arith.constant 0 : index
    %c18 = arith.constant 18 : index
    %6 = vector.load %arg1[%c0_6, %c0_7, %c18] : memref<1x8x896xbf16, #tpu.memory_space<vmem>>, vector<1x8x768xbf16>
    %7 = vector.shape_cast %6 : vector<1x8x768xbf16> to vector<8x768xbf16>
    %c0_8 = arith.constant 0 : index
    %c0_9 = arith.constant 0 : index
    %c19 = arith.constant 19 : index
    %8 = vector.load %arg1[%c0_8, %c0_9, %c19] : memref<1x8x896xbf16, #tpu.memory_space<vmem>>, vector<1x8x768xbf16>
    %9 = vector.shape_cast %8 : vector<1x8x768xbf16> to vector<8x768xbf16>
    %c0_10 = arith.constant 0 : index
    %c0_11 = arith.constant 0 : index
    %c20 = arith.constant 20 : index
    %10 = vector.load %arg1[%c0_10, %c0_11, %c20] : memref<1x8x896xbf16, #tpu.memory_space<vmem>>, vector<1x8x768xbf16>
    %11 = vector.shape_cast %10 : vector<1x8x768xbf16> to vector<8x768xbf16>
    %c0_12 = arith.constant 0 : index
    %c0_13 = arith.constant 0 : index
    %c36 = arith.constant 36 : index
    %12 = vector.load %arg1[%c0_12, %c0_13, %c36] : memref<1x8x896xbf16, #tpu.memory_space<vmem>>, vector<1x8x768xbf16>
    %13 = vector.shape_cast %12 : vector<1x8x768xbf16> to vector<8x768xbf16>
    %c0_14 = arith.constant 0 : index
    %c0_15 = arith.constant 0 : index
    %c37 = arith.constant 37 : index
    %14 = vector.load %arg1[%c0_14, %c0_15, %c37] : memref<1x8x896xbf16, #tpu.memory_space<vmem>>, vector<1x8x768xbf16>
    %15 = vector.shape_cast %14 : vector<1x8x768xbf16> to vector<8x768xbf16>
    %c0_16 = arith.constant 0 : index
    %c0_17 = arith.constant 0 : index
    %c38 = arith.constant 38 : index
    %16 = vector.load %arg1[%c0_16, %c0_17, %c38] : memref<1x8x896xbf16, #tpu.memory_space<vmem>>, vector<1x8x768xbf16>
    %17 = vector.shape_cast %16 : vector<1x8x768xbf16> to vector<8x768xbf16>
    %18 = tpu.concatenate %1, %3, %5, %7, %9, %11, %13, %15, %17 in 0 : vector<8x768xbf16>, vector<8x768xbf16>, vector<8x768xbf16>, vector<8x768xbf16>, vector<8x768xbf16>, vector<8x768xbf16>, vector<8x768xbf16>, vector<8x768xbf16>, vector<8x768xbf16> -> vector<72x768xbf16>
    %c0_18 = arith.constant 0 : index
    %c0_19 = arith.constant 0 : index
    %19 = vector.load %arg2[%c0_18, %c0_19] : memref<8x72xbf16, #tpu.memory_space<vmem>>, vector<8x72xbf16>
    %cst = arith.constant dense<0.000000e+00> : vector<8x768xf32>
    %20 = tpu.matmul %19, %18, %cst {dimension_numbers = #tpu.dot_dimension_numbers<[1], [0], [0], [1], [0, 0, 1, 1], [], []>} : vector<8x72xbf16>, vector<72x768xbf16>, vector<8x768xf32> -> vector<8x768xf32>
    %c0_20 = arith.constant 0 : index
    %c0_21 = arith.constant 0 : index
    %21 = vector.load %arg3[%c0_20, %c0_21] : memref<8x1xf32, #tpu.memory_space<vmem>>, vector<8x1xf32>
    %22 = vector.broadcast %21 : vector<8x1xf32> to vector<8x768xf32>
    %23 = arith.mulf %20, %22 : vector<8x768xf32>
    %c0_22 = arith.constant 0 : index
    %c0_23 = arith.constant 0 : index
    %24 = vector.load %arg4[%c0_22, %c0_23] : memref<8x1xf32, #tpu.memory_space<vmem>>, vector<8x1xf32>
    %25 = vector.broadcast %24 : vector<8x1xf32> to vector<8x768xf32>
    %26 = arith.addf %23, %25 : vector<8x768xf32>
    %cst_24 = arith.constant 0.000000e+00 : f32
    %27 = vector.broadcast %cst_24 : f32 to vector<8x768xf32>
    %28 = arith.maximumf %26, %27 : vector<8x768xf32>
    %29 = vector.extract_strided_slice %28 {offsets = [0, 0], sizes = [8, 384], strides = [1, 1]} : vector<8x768xf32> to vector<8x384xf32>
    %c0_25 = arith.constant 0 : index
    %c0_26 = arith.constant 0 : index
    %c0_27 = arith.constant 0 : index
    %30 = vector.load %arg5[%c0_25, %c0_26, %c0_27] : memref<2x8x384xf32, #tpu.memory_space<vmem>>, vector<1x8x384xf32>
    %31 = vector.shape_cast %30 : vector<1x8x384xf32> to vector<8x384xf32>
    %32 = vector.shape_cast %29 : vector<8x384xf32> to vector<1x8x384xf32>
    tpu.vector_store %arg5[%c0_25, %c0_26, %c0_27], %32 {strides = array<i32>} : memref<2x8x384xf32, #tpu.memory_space<vmem>>, vector<1x8x384xf32>,
    %33 = vector.extract_strided_slice %28 {offsets = [0, 384], sizes = [8, 384], strides = [1, 1]} : vector<8x768xf32> to vector<8x384xf32>
    %c1_28 = arith.constant 1 : index
    %c0_29 = arith.constant 0 : index
    %c0_30 = arith.constant 0 : index
    %34 = vector.load %arg5[%c1_28, %c0_29, %c0_30] : memref<2x8x384xf32, #tpu.memory_space<vmem>>, vector<1x8x384xf32>
    %35 = vector.shape_cast %34 : vector<1x8x384xf32> to vector<8x384xf32>
    %36 = vector.shape_cast %33 : vector<8x384xf32> to vector<1x8x384xf32>
    tpu.vector_store %arg5[%c1_28, %c0_29, %c0_30], %36 {strides = array<i32>} : memref<2x8x384xf32, #tpu.memory_space<vmem>>, vector<1x8x384xf32>,
    return
  }
  func.func @transform_0(%arg0: i32) -> (i32, i32, i32) {
    %c0_i32 = arith.constant 0 : i32
    %c0_i32_0 = arith.constant 0 : i32
    %c0_i32_1 = arith.constant 0 : i32
    return %arg0, %c0_i32, %c0_i32_0 : i32, i32, i32
  }
  func.func @transform_1(%arg0: i32) -> (i32, i32) {
    %c0_i32 = arith.constant 0 : i32
    %c0_i32_0 = arith.constant 0 : i32
    %c0_i32_1 = arith.constant 0 : i32
    return %c0_i32, %c0_i32_0 : i32, i32
  }
  func.func @transform_2(%arg0: i32) -> (i32, i32) {
    %c0_i32 = arith.constant 0 : i32
    %c0_i32_0 = arith.constant 0 : i32
    %c0_i32_1 = arith.constant 0 : i32
    return %c0_i32, %c0_i32_0 : i32, i32
  }
  func.func @transform_3(%arg0: i32) -> (i32, i32) {
    %c0_i32 = arith.constant 0 : i32
    %c0_i32_0 = arith.constant 0 : i32
    %c0_i32_1 = arith.constant 0 : i32
    return %c0_i32, %c0_i32_0 : i32, i32
  }
  func.func @transform_4(%arg0: i32) -> (i32, i32, i32) {
    %c0_i32 = arith.constant 0 : i32
    %c0_i32_0 = arith.constant 0 : i32
    %c0_i32_1 = arith.constant 0 : i32
    return %arg0, %c0_i32, %c0_i32_0 : i32, i32, i32
  }
}

</mosaic_0001>

<bundles_post_ra>
// kernel: tpu_custom_call.1
= control target key start
LH: loop header
LB: loop body
LE: loop exit
PB: predicated region body
PF: predicated region fallthrough
CT: control target
= control target key end

     0   :  { %9 = vsyncpa [#allocation3], 0  ;;  %s919_s0 = inlined_call_operand.hbm [shape: bf16[1,8,896], index: 0, kind: input, shape index: {}]   ;;  %s920_s1 = inlined_call_operand.vmem [shape: bf16[8,72], index: 1, kind: input, shape index: {}]   ;;  %s921_s2 = inlined_call_operand.vmem [shape: f32[8,1], index: 2, kind: input, shape index: {}]   ;;  %s922_s3 = inlined_call_operand.vmem [shape: f32[8,1], index: 3, kind: input, shape index: {}]   ;;  %s923_s4 = inlined_call_operand.hbm [shape: f32[2,8,384], index: 4, kind: output, shape index: {}]  }
   0x1   :  { %10 = vsyncpa [#allocation4], 0  ;;  %s621_s15 = smov [#allocation2]  }
   0x2   :  { %s17_s16 = sshll.u32 %s621_s15, 4  ;;  %s18_s16 = int_to_ptr.vmem [resolvable:$true] %s17_s16 }
   0x3   :  { %s585_s17 = scalar_lea.vmem %s18_s16, 448  ;;  %p590_p1 = scmp.lt.s32.totalorder %s18_s16, %s18_s16 }
   0x4   :  { %p586_p0 = scmp.ne.s32.totalorder %s18_s16, %s585_s17  ;;  %p591_p2 = scmp.lt.s32.totalorder %s585_s17, %s585_s17 }
   0x6   :  { %p592_p3 = por %p591_p2, %p590_p1 }
   0x8   :  { %p593_p4 = pnand %p592_p3, %p586_p0 }
   0xa   :  { %596 = shalt.err (!%p593_p4)
}
   0xb   :  { %20 = dma.hbm_to_vmem [thread:$0]  %s919_s0, 448, %s18_s16, [#allocation3]  }
   0xc   :  { %617 = dma.done.wait [#allocation3], 448  }
   0xd   :  { %618 = vsyncadd [#allocation3], 4294966848  ;;  %v35_v0 = vld [vmem:[#allocation2 + $0x8] sm:$0xff]  ;;  %v34_v1 = vld [vmem:[#allocation2] sm:$0xff]  ;;  %s622_s20 = smov 90   ;;  %s623_s21 = smov 92  }
   0xe   :  { %v662_v2 = vcombine.low %v35_v0, %v35_v0  ;;  %v664_v3 = vcombine.low %v34_v1, %v34_v1  ;;  %v670_v4 = vcombine.high %v34_v1, %v34_v1  ;;  %s624_s0 = smov 91   ;;  %s625_s22 = smov 109   ;;  %v36_v5 = vld [vmem:[#allocation2 + $0x10] sm:$0xff]  ;;  %v630_v6 = vmov 0   ;;  %v575_v9 = vld [vmem:[#allocation2 + $0x18] ss:$0 sps:$4 sm:$0xff]  }
   0xf   :  { %s626_s23 = smov 108   ;;  %s627_s24 = smov 126   ;;  %391 = vmatprep.mubr.bf16.mxu0 %v630_v6  ;;  %432 = vmatprep.mubr.bf16.mxu1 %v630_v6  ;;  %v720_v7 = vcombine.low %v36_v5, %v36_v5  ;;  %v722_v8 = vcombine.high %v35_v0, %v35_v0  ;;  %v728_v10 = vcombine.high %v36_v5, %v36_v5  ;;  %v482_v11 = vld [vmem:[%s921_s2] sm:$0xff]  ;;  %vm232_vm0 = vcmask 736256  }
  0x10   :  { %222 = vrot.lane.b32.xlu1 %v662_v2, %s622_s20  ;;  %218 = vrot.lane.b32.xlu0 %v664_v3, %s622_s20  ;;  %s628_s25 = smov 110   ;;  %s629_s26 = smov 127   ;;  %v494_v12 = vld [vmem:[%s922_s3] sm:$0xff]  ;;  %vm239_vm1 = vcmask 1043456   ;;  %vm190_vm2 = vcmask 752640   ;;  %vm211_vm3 = vcmask 744448  }
  0x11   :  { %568 = vset.pattern.permute.xlu0 %v630_v6  ;;  %569 = vset.pattern.permute.xlu1 %v630_v6  ;;  %vm148_vm4 = vcmask 891904   ;;  %vm169_vm5 = vcmask 883712   ;;  %vm106_vm6 = vcmask 1031168   ;;  %vm127_vm7 = vcmask 900096   ;;  %v843_v0 = vld [vmem:[%s920_s1] sm:$0xf] }
  0x12   :  { %vm85_vm8 = vcmask 1039360   ;;  %vm337_vm9 = vcmask 588800   ;;  %s631_s1 = smov [#allocation5]  }
  0x13   :  { %s524_s5 = sshll.u32 %s631_s1, 4  ;;  %s525_s5 = int_to_ptr.vmem [resolvable:$true] %s524_s5 }
  0x14   :  { %178 = vrot.lane.b32.xlu1 %v670_v4, %s623_s21  ;;  %220 = vrot.lane.b32.xlu0 %v670_v4, %s622_s20  ;;  %s597_s6 = scalar_lea.vmem %s525_s5, 768  ;;  %p602_p6 = scmp.lt.s32.totalorder %s525_s5, %s525_s5 }
  0x15   :  { %p598_p5 = scmp.ne.s32.totalorder %s525_s5, %s597_s6  ;;  %p603_p7 = scmp.lt.s32.totalorder %s597_s6, %s597_s6 }
  0x17   :  { %p604_p8 = por %p603_p7, %p602_p6 }
  0x18   :  { %199 = vrot.lane.b32.xlu1 %v670_v4, %s624_s0  ;;  %180 = vrot.lane.b32.xlu0 %v662_v2, %s623_s21 }
  0x19   :  { %p605_p9 = pnand %p604_p8, %p598_p5 }
  0x1c   :  { %176 = vrot.lane.b32.xlu1 %v664_v3, %s623_s21  ;;  %201 = vrot.lane.b32.xlu0 %v662_v2, %s624_s0 }
  0x20   :  { %136 = vrot.lane.b32.xlu1 %v670_v4, %s625_s22  ;;  %197 = vrot.lane.b32.xlu0 %v664_v3, %s624_s0 }
  0x24   :  { %157 = vrot.lane.b32.xlu1 %v670_v4, %s626_s23  ;;  %138 = vrot.lane.b32.xlu0 %v662_v2, %s625_s22 }
  0x28   :  { %134 = vrot.lane.b32.xlu1 %v664_v3, %s625_s22  ;;  %159 = vrot.lane.b32.xlu0 %v662_v2, %s626_s23 }
  0x2c   :  { %94 = vrot.lane.b32.xlu1 %v670_v4, %s627_s24  ;;  %155 = vrot.lane.b32.xlu0 %v664_v3, %s626_s23 }
  0x30   :  { %115 = vrot.lane.b32.xlu1 %v670_v4, %s628_s25  ;;  %96 = vrot.lane.b32.xlu0 %v662_v2, %s627_s24 }
  0x34   :  { %92 = vrot.lane.b32.xlu1 %v664_v3, %s627_s24  ;;  %117 = vrot.lane.b32.xlu0 %v662_v2, %s628_s25 }
  0x38   :  { %73 = vrot.lane.b32.xlu1 %v670_v4, %s629_s26  ;;  %113 = vrot.lane.b32.xlu0 %v664_v3, %s628_s25 }
  0x3c   :  { %71 = vrot.lane.b32.xlu1 %v664_v3, %s629_s26  ;;  %75 = vrot.lane.b32.xlu0 %v662_v2, %s629_s26 }
  0x40   :  { %226 = vrot.lane.b32.xlu1 %v720_v7, %s622_s20  ;;  %224 = vrot.lane.b32.xlu0 %v722_v8, %s622_s20 }
  0x44   :  { %230 = vrot.lane.b32.xlu1 %v575_v9, %s622_s20  ;;  %228 = vrot.lane.b32.xlu0 %v728_v10, %s622_s20 }
  0x48   :  { %184 = vrot.lane.b32.xlu1 %v720_v7, %s623_s21  ;;  %182 = vrot.lane.b32.xlu0 %v722_v8, %s623_s21 }
  0x4c   :  { %188 = vrot.lane.b32.xlu1 %v575_v9, %s623_s21  ;;  %186 = vrot.lane.b32.xlu0 %v728_v10, %s623_s21 }
  0x50   :  { %205 = vrot.lane.b32.xlu1 %v720_v7, %s624_s0  ;;  %203 = vrot.lane.b32.xlu0 %v722_v8, %s624_s0 }
  0x54   :  { %209 = vrot.lane.b32.xlu1 %v575_v9, %s624_s0  ;;  %207 = vrot.lane.b32.xlu0 %v728_v10, %s624_s0 }
  0x58   :  { %142 = vrot.lane.b32.xlu1 %v720_v7, %s625_s22  ;;  %140 = vrot.lane.b32.xlu0 %v722_v8, %s625_s22 }
  0x5c   :  { %146 = vrot.lane.b32.xlu1 %v575_v9, %s625_s22  ;;  %144 = vrot.lane.b32.xlu0 %v728_v10, %s625_s22 }
  0x60   :  { %163 = vrot.lane.b32.xlu1 %v720_v7, %s626_s23  ;;  %161 = vrot.lane.b32.xlu0 %v722_v8, %s626_s23 }
  0x64   :  { %167 = vrot.lane.b32.xlu1 %v575_v9, %s626_s23  ;;  %165 = vrot.lane.b32.xlu0 %v728_v10, %s626_s23 }
  0x68   :  { %100 = vrot.lane.b32.xlu1 %v720_v7, %s627_s24  ;;  %98 = vrot.lane.b32.xlu0 %v722_v8, %s627_s24 }
  0x6c   :  { %104 = vrot.lane.b32.xlu1 %v575_v9, %s627_s24  ;;  %102 = vrot.lane.b32.xlu0 %v728_v10, %s627_s24 }
  0x70   :  { %121 = vrot.lane.b32.xlu1 %v720_v7, %s628_s25  ;;  %119 = vrot.lane.b32.xlu0 %v722_v8, %s628_s25 }
  0x74   :  { %125 = vrot.lane.b32.xlu1 %v575_v9, %s628_s25  ;;  %123 = vrot.lane.b32.xlu0 %v728_v10, %s628_s25 }
  0x78   :  { %79 = vrot.lane.b32.xlu1 %v720_v7, %s629_s26  ;;  %77 = vrot.lane.b32.xlu0 %v722_v8, %s629_s26 }
  0x7c   :  { %83 = vrot.lane.b32.xlu1 %v575_v9, %s629_s26  ;;  %81 = vrot.lane.b32.xlu0 %v728_v10, %s629_s26 }
  0x80   :  { %485 = vperm.xlu0 %568, %v482_v11   ;;  %497 = vperm.xlu1 %569, %v494_v12  }
  0x82   :  { %v788_v13 = vpop.permute.xlu1 %222  ;;  %v219_v14 = vpop.permute.xlu0 %218 }
  0x86   :  { %v179_v15 = vpop.permute.xlu1 %178  ;;  %v221_v16 = vpop.permute.xlu0 %220 }
  0x87   :  { %v234_v17 = vsel %vm232_vm0, %v221_v16, %v788_v13  ;;  %v233_v18 = vsel %vm232_vm0, %v219_v14, %v221_v16 }
  0x88   :  { %549 = vmatprep.subr.msk.bf16.mxu0 %vm239_vm1, %v234_v17  ;;  %v342_v19 = vsel %vm239_vm1, %v233_v18, 0 }
  0x89   :  { %366 = vmatpush1.bf16.msra.mxu0 %v342_v19 }
  0x8a   :  { %v200_v20 = vpop.permute.xlu1 %199  ;;  %v795_v21 = vpop.permute.xlu0 %180 }
  0x8b   :  { %v192_v24 = vsel %vm190_vm2, %v179_v15, %v795_v21 }
  0x8e   :  { %v177_v22 = vpop.permute.xlu1 %176  ;;  %v797_v23 = vpop.permute.xlu0 %201 }
  0x8f   :  { %v213_v25 = vsel %vm211_vm3, %v200_v20, %v797_v23  ;;  %v191_v29 = vsel %vm190_vm2, %v177_v22, %v179_v15 }
  0x90   :  { %v318_v26 = vsel %vm239_vm1, %v192_v24, %v213_v25 }
  0x91   :  { %367 = vmatprep.subr.bf16.mxu0 %v318_v26 }
  0x92   :  { %v137_v27 = vpop.permute.xlu1 %136  ;;  %v198_v28 = vpop.permute.xlu0 %197 }
  0x93   :  { %v212_v30 = vsel %vm211_vm3, %v198_v28, %v200_v20 }
  0x94   :  { %v314_v31 = vsel %vm239_vm1, %v191_v29, %v212_v30 }
  0x95   :  { %368 = vmatpush1.bf16.msra.mxu0 %v314_v31 }
  0x96   :  { %v158_v32 = vpop.permute.xlu1 %157  ;;  %v807_v33 = vpop.permute.xlu0 %138 }
  0x97   :  { %v150_v36 = vsel %vm148_vm4, %v137_v27, %v807_v33 }
  0x9a   :  { %v135_v34 = vpop.permute.xlu1 %134  ;;  %v809_v35 = vpop.permute.xlu0 %159 }
  0x9b   :  { %v171_v37 = vsel %vm169_vm5, %v158_v32, %v809_v35  ;;  %v149_v41 = vsel %vm148_vm4, %v135_v34, %v137_v27 }
  0x9c   :  { %v294_v38 = vsel %vm239_vm1, %v150_v36, %v171_v37 }
  0x9d   :  { %369 = vmatprep.subr.bf16.mxu0 %v294_v38 }
  0x9e   :  { %v95_v39 = vpop.permute.xlu1 %94  ;;  %v156_v40 = vpop.permute.xlu0 %155 }
  0x9f   :  { %v170_v42 = vsel %vm169_vm5, %v156_v40, %v158_v32 }
  0xa0   :  { %v290_v43 = vsel %vm239_vm1, %v149_v41, %v170_v42 }
  0xa1   :  { %370 = vmatpush1.bf16.msra.mxu0 %v290_v43 }
  0xa2   :  { %v116_v44 = vpop.permute.xlu1 %115  ;;  %v819_v45 = vpop.permute.xlu0 %96 }
  0xa3   :  { %v108_v48 = vsel %vm106_vm6, %v95_v39, %v819_v45 }
  0xa6   :  { %v93_v46 = vpop.permute.xlu1 %92  ;;  %v821_v47 = vpop.permute.xlu0 %117 }
  0xa7   :  { %v129_v49 = vsel %vm127_vm7, %v116_v44, %v821_v47  ;;  %v107_v53 = vsel %vm106_vm6, %v93_v46, %v95_v39 }
  0xa8   :  { %v270_v50 = vsel %vm239_vm1, %v108_v48, %v129_v49 }
  0xa9   :  { %371 = vmatprep.subr.bf16.mxu0 %v270_v50 }
  0xaa   :  { %v74_v51 = vpop.permute.xlu1 %73  ;;  %v114_v52 = vpop.permute.xlu0 %113 }
  0xab   :  { %v128_v54 = vsel %vm127_vm7, %v114_v52, %v116_v44 }
  0xac   :  { %v266_v55 = vsel %vm239_vm1, %v107_v53, %v128_v54 }
  0xad   :  { %372 = vmatpush1.bf16.msra.mxu0 %v266_v55 }
  0xae   :  { %v72_v56 = vpop.permute.xlu1 %71  ;;  %v831_v57 = vpop.permute.xlu0 %75 }
  0xaf   :  { %v86_v58 = vsel %vm85_vm8, %v72_v56, %v74_v51  ;;  %v87_v59 = vsel %vm85_vm8, %v74_v51, %v831_v57 }
  0xb0   :  { %v246_v60 = vsel %vm239_vm1, %v670_v4, %v87_v59  ;;  %v242_v61 = vsel %vm239_vm1, %v664_v3, %v86_v58 }
  0xb1   :  { %373 = vmatprep.subr.bf16.mxu0 %v246_v60 }
  0xb2   :  { %v227_v62 = vpop.permute.xlu1 %226  ;;  %v225_v63 = vpop.permute.xlu0 %224  ;;  %374 = vmatpush1.bf16.msra.mxu0 %v242_v61 }
  0xb3   :  { %v236_v1 = vsel %vm232_vm0, %v225_v63, %v227_v62  ;;  %v235_v5 = vsel %vm232_vm0, %v788_v13, %v225_v63 }
  0xb4   :  { %551 = vmatprep.subr.msk.bf16.mxu1 %vm239_vm1, %v236_v1  ;;  %v348_v4 = vsel %vm239_vm1, %v235_v5, 0 }
  0xb5   :  { %407 = vmatpush1.bf16.msra.mxu1 %v348_v4  ;;  %550 = vmatmul.mubr.msk.bf16.vlgmr.msra.gmra.mxu0 %vm337_vm9, %v843_v0 }
  0xb6   :  { %v231_v3 = vpop.permute.xlu1 %230  ;;  %v229_v9 = vpop.permute.xlu0 %228  ;;  %473 = vmatprep.mubr.bf16.mxu0 %v630_v6 }
  0xb7   :  { %v237_v11 = vsel %vm232_vm0, %v227_v62, %v229_v9  ;;  %v238_v12 = vsel %vm232_vm0, %v229_v9, %v231_v3 }
  0xb8   :  { %v354_v14 = vsel %vm239_vm1, %v237_v11, 0  ;;  %553 = vmatprep.subr.msk.bf16.mxu0 %vm239_vm1, %v238_v12 }
  0xb9   :  { %448 = vmatpush1.bf16.msra.mxu0 %v354_v14 }
  0xba   :  { %v185_v13 = vpop.permute.xlu1 %184  ;;  %v183_v15 = vpop.permute.xlu0 %182 }
  0xbb   :  { %v193_v20 = vsel %vm190_vm2, %v795_v21, %v183_v15  ;;  %v194_v6 = vsel %vm190_vm2, %v183_v15, %v185_v13 }
  0xbe   :  { %v189_v16 = vpop.permute.xlu1 %188  ;;  %v187_v17 = vpop.permute.xlu0 %186 }
  0xbf   :  { %v195_v29 = vsel %vm190_vm2, %v185_v13, %v187_v17  ;;  %v196_v30 = vsel %vm190_vm2, %v187_v17, %v189_v16 }
  0xc2   :  { %v206_v18 = vpop.permute.xlu1 %205  ;;  %v204_v19 = vpop.permute.xlu0 %203 }
  0xc3   :  { %v214_v22 = vsel %vm211_vm3, %v797_v23, %v204_v19  ;;  %v215_v24 = vsel %vm211_vm3, %v204_v19, %v206_v18 }
  0xc4   :  { %v326_v25 = vsel %vm239_vm1, %v194_v6, %v215_v24  ;;  %v322_v26 = vsel %vm239_vm1, %v193_v20, %v214_v22 }
  0xc5   :  { %408 = vmatprep.subr.bf16.mxu1 %v326_v25 }
  0xc6   :  { %v210_v27 = vpop.permute.xlu1 %209  ;;  %409 = vmatpush1.bf16.msra.mxu1 %v322_v26  ;;  %v208_v28 = vpop.permute.xlu0 %207 }
  0xc7   :  { %v216_v21 = vsel %vm211_vm3, %v206_v18, %v208_v28  ;;  %v217_v31 = vsel %vm211_vm3, %v208_v28, %v210_v27 }
  0xc8   :  { %v334_v23 = vsel %vm239_vm1, %v196_v30, %v217_v31  ;;  %v330_v32 = vsel %vm239_vm1, %v195_v29, %v216_v21 }
  0xc9   :  { %449 = vmatprep.subr.bf16.mxu0 %v334_v23 }
  0xca   :  { %v143_v34 = vpop.permute.xlu1 %142  ;;  %v141_v36 = vpop.permute.xlu0 %140  ;;  %450 = vmatpush1.bf16.msra.mxu0 %v330_v32 }
  0xcb   :  { %v151_v41 = vsel %vm148_vm4, %v807_v33, %v141_v36  ;;  %v152_v42 = vsel %vm148_vm4, %v141_v36, %v143_v34 }
  0xce   :  { %v147_v37 = vpop.permute.xlu1 %146  ;;  %v145_v38 = vpop.permute.xlu0 %144 }
  0xcf   :  { %v153_v51 = vsel %vm148_vm4, %v143_v34, %v145_v38  ;;  %v154_v52 = vsel %vm148_vm4, %v145_v38, %v147_v37 }
  0xd2   :  { %v164_v39 = vpop.permute.xlu1 %163  ;;  %v162_v40 = vpop.permute.xlu0 %161 }
  0xd3   :  { %v172_v43 = vsel %vm169_vm5, %v809_v35, %v162_v40  ;;  %v173_v44 = vsel %vm169_vm5, %v162_v40, %v164_v39 }
  0xd4   :  { %v302_v46 = vsel %vm239_vm1, %v152_v42, %v173_v44  ;;  %v298_v48 = vsel %vm239_vm1, %v151_v41, %v172_v43 }
  0xd5   :  { %410 = vmatprep.subr.bf16.mxu1 %v302_v46 }
  0xd6   :  { %v168_v49 = vpop.permute.xlu1 %167  ;;  %411 = vmatpush1.bf16.msra.mxu1 %v298_v48  ;;  %v166_v50 = vpop.permute.xlu0 %165 }
  0xd7   :  { %v174_v33 = vsel %vm169_vm5, %v164_v39, %v166_v50  ;;  %v175_v53 = vsel %vm169_vm5, %v166_v50, %v168_v49 }
  0xd8   :  { %v310_v35 = vsel %vm239_vm1, %v154_v52, %v175_v53  ;;  %v306_v54 = vsel %vm239_vm1, %v153_v51, %v174_v33 }
  0xd9   :  { %451 = vmatprep.subr.bf16.mxu0 %v310_v35 }
  0xda   :  { %v101_v55 = vpop.permute.xlu1 %100  ;;  %v99_v56 = vpop.permute.xlu0 %98  ;;  %452 = vmatpush1.bf16.msra.mxu0 %v306_v54 }
  0xdb   :  { %v109_v62 = vsel %vm106_vm6, %v819_v45, %v99_v56  ;;  %v110_v63 = vsel %vm106_vm6, %v99_v56, %v101_v55 }
  0xde   :  { %v105_v58 = vpop.permute.xlu1 %104  ;;  %v103_v59 = vpop.permute.xlu0 %102 }
  0xdf   :  { %v111_v12 = vsel %vm106_vm6, %v101_v55, %v103_v59  ;;  %v112_v14 = vsel %vm106_vm6, %v103_v59, %v105_v58 }
  0xe2   :  { %v122_v60 = vpop.permute.xlu1 %121  ;;  %v120_v61 = vpop.permute.xlu0 %119 }
  0xe3   :  { %v130_v1 = vsel %vm127_vm7, %v821_v47, %v120_v61  ;;  %v131_v5 = vsel %vm127_vm7, %v120_v61, %v122_v60 }
  0xe4   :  { %v278_v4 = vsel %vm239_vm1, %v110_v63, %v131_v5  ;;  %v274_v3 = vsel %vm239_vm1, %v109_v62, %v130_v1 }
  0xe5   :  { %412 = vmatprep.subr.bf16.mxu1 %v278_v4 }
  0xe6   :  { %v126_v9 = vpop.permute.xlu1 %125  ;;  %413 = vmatpush1.bf16.msra.mxu1 %v274_v3  ;;  %v124_v11 = vpop.permute.xlu0 %123 }
  0xe7   :  { %v132_v45 = vsel %vm127_vm7, %v122_v60, %v124_v11  ;;  %v133_v13 = vsel %vm127_vm7, %v124_v11, %v126_v9 }
  0xe8   :  { %v286_v47 = vsel %vm239_vm1, %v112_v14, %v133_v13  ;;  %v282_v15 = vsel %vm239_vm1, %v111_v12, %v132_v45 }
  0xe9   :  { %453 = vmatprep.subr.bf16.mxu0 %v286_v47 }
  0xea   :  { %v80_v16 = vpop.permute.xlu1 %79  ;;  %v78_v17 = vpop.permute.xlu0 %77  ;;  %454 = vmatpush1.bf16.msra.mxu0 %v282_v15 }
  0xeb   :  { %v88_v18 = vsel %vm85_vm8, %v831_v57, %v78_v17  ;;  %v89_v19 = vsel %vm85_vm8, %v78_v17, %v80_v16 }
  0xec   :  { %v254_v20 = vsel %vm239_vm1, %v722_v8, %v89_v19  ;;  %v250_v6 = vsel %vm239_vm1, %v662_v2, %v88_v18 }
  0xed   :  { %414 = vmatprep.subr.bf16.mxu1 %v254_v20 }
  0xee   :  { %v84_v22 = vpop.permute.xlu1 %83  ;;  %v82_v24 = vpop.permute.xlu0 %81  ;;  %415 = vmatpush1.bf16.msra.mxu1 %v250_v6 }
  0xef   :  { %v90_v25 = vsel %vm85_vm8, %v80_v16, %v82_v24  ;;  %v91_v26 = vsel %vm85_vm8, %v82_v24, %v84_v22 }
  0xf0   :  { %v262_v27 = vsel %vm239_vm1, %v728_v10, %v91_v26  ;;  %v258_v57 = vsel %vm239_vm1, %v720_v7, %v90_v25 }
  0xf1   :  { %552 = vmatmul.mubr.msk.bf16.vlgmr.msra.gmra.mxu1 %vm337_vm9, %v843_v0  ;;  %455 = vmatprep.subr.bf16.mxu0 %v262_v27 }
  0xf2   :  { %456 = vmatpush1.bf16.msra.mxu0 %v258_v57 }
  0xf5   :  { %554 = vmatmul.mubr.msk.bf16.vlgmr.msra.gmra.mxu0 %vm337_vm9, %v843_v0 }
  0xfb   :  { %v486_v2 = vpop.permute.xlu0 %485  ;;  %v498_v28 = vpop.permute.xlu1 %497 }
 0x175   :  { %v393_v8 = vpop.f32.mrf.mxu0 }
 0x176   :  { %v488_v29 = vmul.f32 %v486_v2, %v393_v8 }
 0x177   :  { %v395_v30 = vpop.f32.mrf.mxu0 }
 0x178   :  { %v489_v21 = vmul.f32 %v486_v2, %v395_v30  ;;  %v500_v31 = vadd.f32 %v498_v28, %v488_v29 }
 0x179   :  { %v397_v23 = vpop.f32.mrf.mxu0 }
 0x17a   :  { %v501_v10 = vadd.f32 %v498_v28, %v489_v21  ;;  %v506_v32 = vmax.f32 %v500_v31, 0.0 }
 0x17b   :  { %v398_v34 = vpop.f32.mrf.mxu0 }
 0x17c   :  { %v507_v7 = vmax.f32 %v501_v10, 0.0  ;;  %512 = vst [vmem:[#allocation5] sm:$0xff] %v506_v32 }
 0x17e   :  { %513 = vst [vmem:[#allocation5 + $0x8] sm:$0xff] %v507_v7 }
 0x1b1   :  { %v434_v36 = vpop.f32.mrf.mxu1 }
 0x1b2   :  { %v490_v37 = vmul.f32 %v486_v2, %v434_v36 }
 0x1b3   :  { %v436_v38 = vpop.f32.mrf.mxu1 }
 0x1b4   :  { %v502_v39 = vadd.f32 %v498_v28, %v490_v37  ;;  %v491_v40 = vmul.f32 %v486_v2, %v436_v38 }
 0x1b5   :  { %v438_v0 = vpop.f32.mrf.mxu1  ;;  %v475_v41 = vpop.f32.mrf.mxu0 }
 0x1b6   :  { %v508_v42 = vmax.f32 %v502_v39, 0.0  ;;  %v503_v43 = vadd.f32 %v498_v28, %v491_v40  ;;  %v492_v44 = vmul.f32 %v486_v2, %v475_v41 }
 0x1b7   :  { %v439_v46 = vpop.f32.mrf.mxu1  ;;  %v477_v48 = vpop.f32.mrf.mxu0 }
 0x1b8   :  { %514 = vst [vmem:[#allocation5 + $0x10] sm:$0xff] %v508_v42  ;;  %v509_v49 = vmax.f32 %v503_v43, 0.0  ;;  %v504_v50 = vadd.f32 %v498_v28, %v492_v44  ;;  %v493_v51 = vmul.f32 %v486_v2, %v477_v48 }
 0x1b9   :  { %v479_v52 = vpop.f32.mrf.mxu0 }
 0x1ba   :  { %516 = vst [vmem:[#allocation5 + $0x18] sm:$0xff] %v509_v49  ;;  %v510_v33 = vmax.f32 %v504_v50, 0.0  ;;  %v505_v53 = vadd.f32 %v498_v28, %v493_v51 }
 0x1bb   :  { %v480_v35 = vpop.f32.mrf.mxu0 }
 0x1bc   :  { %517 = vst [vmem:[#allocation5 + $0x20] sm:$0xff] %v510_v33  ;;  %v511_v54 = vmax.f32 %v505_v53, 0.0 }
 0x1be   :  { %518 = vst [vmem:[#allocation5 + $0x28] sm:$0xff] %v511_v54 }
 0x1bf   :  { %608 = shalt.err (!%p605_p9)
}
 0x1c0   :  { %s632_s7 = smov 384   ;;  %s633_s8 = smov 24  }
 0x1c1   :  { %530 = dma.vmem_to_hbm [thread:$0]  %s525_s5, 768, %s923_s4, [#allocation4], %s632_s7, %s632_s7, %s633_s8  }
 0x1c2   :  { %619 = dma.done.wait [#allocation4], 768  }
 0x1c3   :  { %620 = vsyncadd [#allocation4], 4294966528 }
 0x1c4   :  { %534 = vsyncpa [#allocation3], 1 }
 0x1c5   :  { %535 = vsyncpa [#allocation4], 1 }

</bundles_post_ra>
